<compile_context>
chip_gen: v7x
topology: tpu7x:2x2x1
jax: 0.10.0
libtpu: 0.0.40
codegen_flags: <defaults>
</compile_context>

<pallas_src>
import jax
import jax.numpy as jnp
from jax.experimental import pallas as pl
from jax.experimental.pallas import tpu as pltpu

_MIB = 1024 * 1024
# Scoped-VMEM request: comfortably under v7x's 64 MiB physical, above default 32 MiB.
_VMEM_LIMIT_BYTES = 48 * _MIB
# Working-set budget used when sizing blocks (headroom left for compiler temporaries).
_BLOCK_BUDGET_BYTES = 24 * _MIB


# ----------------------------------------------------------------------------
# Kernel 1: hoisted input projection   gates_x = x @ W_ih^T + (b_ih + b_hh)
# ----------------------------------------------------------------------------
def _input_proj_kernel(x_ref, wih_ref, b_ref, out_ref):
    acc = jnp.dot(x_ref[...], wih_ref[...], preferred_element_type=jnp.float32)
    out_ref[...] = (acc + b_ref[...]).astype(out_ref.dtype)   # bf16 store


def _input_projection(x, wih_t_bf16, bias_f32):
    """x: (S, B, D) f32  ->  gates_x: (S, B, 4H) bf16, one batched matmul."""
    S, B, D = x.shape
    H4 = wih_t_bf16.shape[1]
    SB = S * B
    x2 = x.reshape(SB, D).astype(jnp.bfloat16)          # bf16 MXU operand

    # Row block: full if small, else 512 (multiple of 8 -> valid tiling).
    row_blk = SB if SB <= 512 else 512
    # N-blocking over 4H keeps W_ih / out tiles small at production widths.
    col_blk = H4 if H4 <= 1024 else 1024
    n_row = pl.cdiv(SB, row_blk)
    n_col = pl.cdiv(H4, col_blk)
    # NOTE: with cdiv, partial trailing blocks are index-clamped and recompute a
    # few overlapping rows/cols with identical values -- harmless for a pure map.

    # W_ih / bias are grid-constant iff there is a single column block; then they
    # can be single-buffered (Buffered(1)) to reclaim VMEM for larger row blocks.
    if n_col == 1:
        wih_spec = pl.BlockSpec((D, col_blk), lambda r, c: (0, c),
                                pipeline_mode=pl.Buffered(1))
        b_spec = pl.BlockSpec((1, col_blk), lambda r, c: (0, c),
                              pipeline_mode=pl.Buffered(1))
    else:
        wih_spec = pl.BlockSpec((D, col_blk), lambda r, c: (0, c))
        b_spec = pl.BlockSpec((1, col_blk), lambda r, c: (0, c))

    gx = pl.pallas_call(
        _input_proj_kernel,
        out_shape=jax.ShapeDtypeStruct((SB, H4), jnp.bfloat16),
        grid_spec=pltpu.PrefetchScalarGridSpec(
            num_scalar_prefetch=0,
            grid=(n_row, n_col),
            in_specs=[
                pl.BlockSpec((row_blk, D), lambda r, c: (r, 0)),
                wih_spec,
                b_spec,
            ],
            out_specs=pl.BlockSpec((row_blk, col_blk), lambda r, c: (r, c)),
        ),
        compiler_params=pltpu.CompilerParams(
            dimension_semantics=("parallel", "parallel"),
            vmem_limit_bytes=_VMEM_LIMIT_BYTES),
    )(x2, wih_t_bf16, bias_f32)
    return gx.reshape(S, B, H4)


# ----------------------------------------------------------------------------
# Kernel 2: sequential recurrence, T_BLK timesteps per grid step
# ----------------------------------------------------------------------------
def _lstm_recurrence_kernel(gx_ref, whh_ref, out_ref, h_scr, c_scr):
    H = h_scr.shape[-1]
    t_blk = gx_ref.shape[0]

    # Zero-init hidden/cell state at the first time block of each batch block
    # (torch default initial state).
    @pl.when(pl.program_id(1) == 0)
    def _():
        h_scr[...] = jnp.zeros_like(h_scr)
        c_scr[...] = jnp.zeros_like(c_scr)

    whh = whh_ref[...]                                   # (H, 4H) bf16, VMEM-resident

    def step(t, carry):
        h, c = carry
        # Only the recurrent matmul remains on the sequential path.
        gates = gx_ref[t].astype(jnp.float32) + jnp.dot(
            h.astype(whh.dtype), whh, preferred_element_type=jnp.float32)
        # TODO(synk): sub-128-lane slices when H < 128; make H a 128-multiple at
        # production for lane-dense extraction/stores.
        i = jax.nn.sigmoid(gates[:, 0 * H:1 * H])
        f = jax.nn.sigmoid(gates[:, 1 * H:2 * H])
        g = jnp.tanh(gates[:, 2 * H:3 * H])
        o = jax.nn.sigmoid(gates[:, 3 * H:4 * H])
        c = f * c + i * g
        h = o * jnp.tanh(c)
        out_ref[t] = h.astype(out_ref.dtype)             # stays in the VMEM out block
        return (h, c)

    # Partial unroll: keeps LLO scheduling visibility without blowing vreg
    # pressure when T_BLK is large.
    unroll = t_blk if t_blk <= 8 else 8
    h, c = jax.lax.fori_loop(0, t_blk, step,
                             (h_scr[...], c_scr[...]), unroll=unroll)
    h_scr[...] = h
    c_scr[...] = c


def _pick_time_block(S, B, H, budget_bytes=_BLOCK_BUDGET_BYTES):
    """Largest divisor of S whose VMEM working set fits the block budget."""
    H4 = 4 * H
    fixed = H * H4 * 2 + 2 * B * H * 4               # W_hh (bf16, 1 buf) + h/c scratch
    per_t = 2 * (B * H4 * 2) + 2 * (B * H * 4)       # gx blk (bf16, 2 bufs) + out blk (f32, 2 bufs)
    max_t = max(1, (budget_bytes - fixed) // per_t)
    max_t = int(min(max_t, 256, S))
    # Time tiling must divide S exactly: the recurrence carries state, so index
    # clamping on a partial trailing block would corrupt it.
    for cand in range(max_t, 0, -1):
        if S % cand == 0:
            return cand
    return 1


def _lstm_recurrence(gates_x_bf16, whh_t_bf16, H):
    S, B, H4 = gates_x_bf16.shape

    # Batch split (feeds v7x's two TensorCores when B is large); one block at
    # small B and on single-core chips. B % 32 keeps bf16 sublane tiling legal.
    n_b = 2 if (B >= 32 and B % 32 == 0) else 1
    b_blk = B // n_b
    t_blk = _pick_time_block(S, b_blk, H)

    return pl.pallas_call(
        _lstm_recurrence_kernel,
        out_shape=jax.ShapeDtypeStruct((S, B, H), jnp.float32),
        grid_spec=pltpu.PrefetchScalarGridSpec(
            num_scalar_prefetch=0,
            grid=(n_b, S // t_blk),
            in_specs=[
                pl.BlockSpec((t_blk, b_blk, H4), lambda b, t: (t, b, 0)),
                pl.BlockSpec((H, H4), lambda b, t: (0, 0),
                             pipeline_mode=pl.Buffered(1)),   # grid-constant weight
            ],
            out_specs=pl.BlockSpec((t_blk, b_blk, H), lambda b, t: (t, b, 0)),
            scratch_shapes=[
                pltpu.VMEM((b_blk, H), jnp.float32),          # h carried across time
                pltpu.VMEM((b_blk, H), jnp.float32),          # c carried across time
            ],
        ),
        compiler_params=pltpu.CompilerParams(
            dimension_semantics=("parallel", "arbitrary"),    # batch parallel, time serial
            vmem_limit_bytes=_VMEM_LIMIT_BYTES),
    )(gates_x_bf16, whh_t_bf16)


def lstm_layer_pallas(x, wih_t_bf16, whh_t_bf16, bias_f32):
    """One LSTM layer.

    x:          (S, B, D_in) f32
    wih_t_bf16: (D_in, 4H)   = W_ih.T, bf16
    whh_t_bf16: (H, 4H)      = W_hh.T, bf16
    bias_f32:   (1, 4H)      = b_ih + b_hh, f32
    returns (S, B, H) f32
    """
    H = whh_t_bf16.shape[0]
    gates_x = _input_projection(x, wih_t_bf16, bias_f32)   # bf16 intermediate
    return _lstm_recurrence(gates_x, whh_t_bf16, H)


class LSTMPallas:
    """Mirrors MachineLearning/lstmModel.py::LSTM forward (returns lstm_out only)."""

    def __init__(self, input_dim, hidden_dim, batch_size, sequence_dim,
                 num_layers=2, key=jax.random.PRNGKey(0)):
        self.input_dim = input_dim
        self.hidden_dim = hidden_dim
        self.batch_size = batch_size
        self.sequence_dim = sequence_dim
        self.num_layers = num_layers

        # PyTorch-style uniform(-1/sqrt(H), 1/sqrt(H)) init.
        bound = 1.0 / (hidden_dim ** 0.5)
        self.params = []
        for layer in range(num_layers):
            d_in = input_dim if layer == 0 else hidden_dim
            key, k1, k2, k3, k4 = jax.random.split(key, 5)
            w_ih = jax.random.uniform(k1, (4 * hidden_dim, d_in),
                                      minval=-bound, maxval=bound, dtype=jnp.float32)
            w_hh = jax.random.uniform(k2, (4 * hidden_dim, hidden_dim),
                                      minval=-bound, maxval=bound, dtype=jnp.float32)
            b_ih = jax.random.uniform(k3, (4 * hidden_dim,),
                                      minval=-bound, maxval=bound, dtype=jnp.float32)
            b_hh = jax.random.uniform(k4, (4 * hidden_dim,),
                                      minval=-bound, maxval=bound, dtype=jnp.float32)
            self.params.append((
                w_ih.T.astype(jnp.bfloat16),              # (D_in, 4H) bf16
                w_hh.T.astype(jnp.bfloat16),              # (H, 4H)   bf16
                (b_ih + b_hh)[None, :].astype(jnp.float32),
            ))

    def forward(self, inp):
        # torch: input.view(sequence_dim, -1, input_dim)
        x = inp.reshape(self.sequence_dim, -1, self.input_dim).astype(jnp.float32)
        for (wih_t, whh_t, bias) in self.params:
            x = lstm_layer_pallas(x, wih_t, whh_t, bias)
        return x  # (S, B, H)


# ----------------------------------------------------------------------------
# Pure-JAX reference with matching bf16 matmul operands / bf16 gates_x storage.
# vs a full-fp32 torch reference expect ~1e-2 deviation from bf16 rounding.
# ----------------------------------------------------------------------------
def _lstm_layer_ref(x, wih_t_bf16, whh_t_bf16, bias):
    S, B, D = x.shape
    H = whh_t_bf16.shape[0]
    gx = (jnp.dot(x.reshape(S * B, D).astype(jnp.bfloat16), wih_t_bf16,
                  preferred_element_type=jnp.float32) + bias)
    gx = gx.astype(jnp.bfloat16).reshape(S, B, 4 * H)     # matches kernel-1 bf16 store

    def step(carry, gx_t):
        h, c = carry
        gates = gx_t.astype(jnp.float32) + jnp.dot(
            h.astype(jnp.bfloat16), whh_t_bf16, preferred_element_type=jnp.float32)
        i = jax.nn.sigmoid(gates[:, 0 * H:1 * H])
        f = jax.nn.sigmoid(gates[:, 1 * H:2 * H])
        g = jnp.tanh(gates[:, 2 * H:3 * H])
        o = jax.nn.sigmoid(gates[:, 3 * H:4 * H])
        c = f * c + i * g
        h = o * jnp.tanh(c)
        return (h, c), h

    init = (jnp.zeros((B, H), jnp.float32), jnp.zeros((B, H), jnp.float32))
    _, hs = jax.lax.scan(step, init, gx)
    return hs


if __name__ == "__main__":
    INPUT_DIM = 16
    HIDDEN_DIM = 32
    BATCH = 4
    SEQ = 8
    NUM_LAYERS = 2

    key = jax.random.PRNGKey(0)
    k_in, k_params = jax.random.split(key)
    inp = jax.random.normal(k_in, (SEQ, BATCH, INPUT_DIM), dtype=jnp.float32)

    model = LSTMPallas(INPUT_DIM, HIDDEN_DIM, BATCH, SEQ,
                       num_layers=NUM_LAYERS, key=k_params)

    out = model.forward(inp)
    out = jax.block_until_ready(out)
    assert out.shape == (SEQ, BATCH, HIDDEN_DIM), out.shape

    # Cross-check against the pure-JAX reference (same bf16 operands / storage).
    ref = inp
    for (wih_t, whh_t, bias) in model.params:
        ref = _lstm_layer_ref(ref, wih_t, whh_t, bias)
    err = float(jnp.max(jnp.abs(out - ref)))
    assert jnp.allclose(out, ref, atol=2e-3, rtol=2e-3), err

    print("KERNEL_OK")
</pallas_src>

<mosaic_0001>
module attributes {stable_mosaic.version = 11 : i64} {
  func.func @_input_proj_kernel(%arg0: i32, %arg1: i32, %arg2: memref<32x16xbf16, #tpu.memory_space<vmem>>, %arg3: memref<16x128xbf16, #tpu.memory_space<vmem>>, %arg4: memref<1x128xf32, #tpu.memory_space<vmem>>, %arg5: memref<32x128xbf16, #tpu.memory_space<vmem>>) attributes {dimension_semantics = [#tpu.dimension_semantics<parallel>, #tpu.dimension_semantics<parallel>], iteration_bounds = array<i64: 1, 1>, scalar_prefetch = 0 : i64, scratch_operands = 0 : i64, tpu.core_type = #tpu.core_type<tc>, window_params = [{transform_indices = @transform_0, window_bounds = array<i64: 32, 16>}, {pipeline_mode = #tpu.pipeline_mode<synchronous>, transform_indices = @transform_1, window_bounds = array<i64: 16, 128>}, {pipeline_mode = #tpu.pipeline_mode<synchronous>, transform_indices = @transform_2, window_bounds = array<i64: 1, 128>}, {transform_indices = @transform_3, window_bounds = array<i64: 32, 128>}]} {
    %c0 = arith.constant 0 : index
    %c0_0 = arith.constant 0 : index
    %0 = vector.load %arg2[%c0, %c0_0] : memref<32x16xbf16, #tpu.memory_space<vmem>>, vector<32x16xbf16>
    %c0_1 = arith.constant 0 : index
    %c0_2 = arith.constant 0 : index
    %1 = vector.load %arg3[%c0_1, %c0_2] : memref<16x128xbf16, #tpu.memory_space<vmem>>, vector<16x128xbf16>
    %cst = arith.constant dense<0.000000e+00> : vector<32x128xf32>
    %2 = tpu.matmul %0, %1, %cst {dimension_numbers = #tpu.dot_dimension_numbers<[1], [0], [0], [1], [0, 0, 1, 1], [], []>} : vector<32x16xbf16>, vector<16x128xbf16>, vector<32x128xf32> -> vector<32x128xf32>
    %c0_3 = arith.constant 0 : index
    %c0_4 = arith.constant 0 : index
    %3 = vector.load %arg4[%c0_3, %c0_4] : memref<1x128xf32, #tpu.memory_space<vmem>>, vector<1x128xf32>
    %4 = vector.broadcast %3 : vector<1x128xf32> to vector<32x128xf32>
    %5 = arith.addf %2, %4 : vector<32x128xf32>
    %6 = arith.truncf %5 : vector<32x128xf32> to vector<32x128xbf16>
    %c0_5 = arith.constant 0 : index
    %c0_6 = arith.constant 0 : index
    %7 = vector.load %arg5[%c0_5, %c0_6] : memref<32x128xbf16, #tpu.memory_space<vmem>>, vector<32x128xbf16>
    tpu.vector_store %arg5[%c0_5, %c0_6], %6 {strides = array<i32>} : memref<32x128xbf16, #tpu.memory_space<vmem>>, vector<32x128xbf16>,
    return
  }
  func.func @transform_0(%arg0: i32, %arg1: i32) -> (i32, i32) {
    %c0_i32 = arith.constant 0 : i32
    %c0_i32_0 = arith.constant 0 : i32
    return %arg0, %c0_i32 : i32, i32
  }
  func.func @transform_1(%arg0: i32, %arg1: i32) -> (i32, i32) {
    %c0_i32 = arith.constant 0 : i32
    %c0_i32_0 = arith.constant 0 : i32
    return %c0_i32, %arg1 : i32, i32
  }
  func.func @transform_2(%arg0: i32, %arg1: i32) -> (i32, i32) {
    %c0_i32 = arith.constant 0 : i32
    %c0_i32_0 = arith.constant 0 : i32
    return %c0_i32, %arg1 : i32, i32
  }
  func.func @transform_3(%arg0: i32, %arg1: i32) -> (i32, i32) {
    %c0_i32 = arith.constant 0 : i32
    return %arg0, %arg1 : i32, i32
  }
}

</mosaic_0001>

<bundles_post_ra>
// kernel: tpu_custom_call.1
= control target key start
LH: loop header
LB: loop body
LE: loop exit
PB: predicated region body
PF: predicated region fallthrough
CT: control target
= control target key end

     0   :  { %vm45_vm0 = vcmask 130048   ;;  %s248_s0 = inlined_call_operand.vmem [shape: bf16[32,16], index: 0, kind: input, shape index: {}]   ;;  %s249_s1 = inlined_call_operand.vmem [shape: bf16[16,128], index: 1, kind: input, shape index: {}]   ;;  %s250_s2 = inlined_call_operand.vmem [shape: f32[1,128], index: 2, kind: input, shape index: {}]   ;;  %s251_s3 = inlined_call_operand.hbm [shape: bf16[32,128], index: 3, kind: output, shape index: {}]  }
   0x1   :  { %v174_v0 = vld [vmem:[%s249_s1] sm:$0xff]   ;;  %v176_v2 = vld [vmem:[%s248_s0 + $0x8] sm:$0xff]  }
   0x2   :  { %v175_v1 = vld [vmem:[%s248_s0] sm:$0xff]   ;;  %165 = vmatprep.subr.bf16.mxu0 %v174_v0 }
   0x3   :  { %166 = vmatpush3.bf16.msra.mxu0 %v174_v0  ;;  %167 = vmatprep.mubr.msk.bf16.mxu0 %vm45_vm0, %v175_v1 }
   0x4   :  { %8 = vsyncpa [#allocation3], 0  ;;  %v137_v4 = vld [vmem:[%s250_s2] ss:$0 sm:$0xff]  ;;  %s201_s1 = smov [#allocation2]  }
   0x5   :  { %s126_s20 = sshll.u32 %s201_s1, 4  ;;  %s127_s20 = int_to_ptr.vmem [resolvable:$true] %s126_s20 }
   0x6   :  { %168 = vmatmul.mubr.msk.bf16.vlgmr.msra.gmra.mrb[0].mxu0 %vm45_vm0, %v176_v2  ;;  %s177_s0 = scalar_lea.vmem %s127_s20, 256  ;;  %p182_p1 = scmp.lt.s32.totalorder %s127_s20, %s127_s20 }
   0x7   :  { %p178_p0 = scmp.ne.s32.totalorder %s127_s20, %s177_s0  ;;  %p183_p2 = scmp.lt.s32.totalorder %s177_s0, %s177_s0 }
   0x9   :  { %p184_p3 = por %p183_p2, %p182_p1 }
   0xb   :  { %p185_p4 = pnand %p184_p3, %p178_p0 }
  0xd9   :  { %v169_v3 = vpop.f32.mrb[0].mxu0 }
  0xda   :  { %v86_v5 = vpop.f32.mrb[1].mxu0  ;;  %v95_v7 = vadd.f32 %v169_v3, %v137_v4 }
  0xdb   :  { %v170_v6 = vpop.f32.mrb[2].mxu0  ;;  %v87_v10 = vadd.f32 %v137_v4, %v86_v5 }
  0xdc   :  { %v98_v8 = vadd.f32 %v170_v6, %v137_v4  ;;  %v89_v9 = vpop.f32.mrb[3].mxu0 }
  0xdd   :  { %v90_v11 = vadd.f32 %v137_v4, %v89_v9 }
  0xde   :  { %v159_v12 = vpack.c.bf16 %v98_v8, %v95_v7 }
  0xdf   :  { %v154_v13 = vpack.c.bf16 %v90_v11, %v87_v10 }
  0xe0   :  { %161 = vst [vmem:[#allocation2 + $0x8] sm:$0xff] %v159_v12  }
  0xe1   :  { %155 = vst [vmem:[#allocation2] sm:$0xff] %v154_v13  }
  0xe2   :  { %188 = shalt.err (!%p185_p4)
}
  0xe3   :  { %s189_s22 = scalar_lea.hbm %s251_s3, 256 }
  0xe4   :  { %p190_p5 = scmp.ne.s32.totalorder %s251_s3, %s189_s22  ;;  %p193_p6 = scmp.lt.u32.totalorder %s189_s22, %s251_s3 }
  0xe6   :  { %p195_p7 = pnand %p193_p6, %p190_p5 }
  0xe8   :  { %198 = shalt.err (!%p195_p7)
}
  0xe9   :  { %s202_s27 = smov 64   ;;  %s203_s28 = smov 4  }
  0xea   :  { %132 = dma.vmem_to_hbm [thread:$0]  %s127_s20, 256, %s251_s3, [#allocation3], %s202_s27, %s202_s27, %s203_s28  }
  0xeb   :  { %199 = dma.done.wait [#allocation3], 256  }
  0xec   :  { %200 = vsyncadd [#allocation3], 4294967040 }
  0xed   :  { %136 = vsyncpa [#allocation3], 1 }

</bundles_post_ra>
